<compile_context>
chip_gen: v5e
topology: v5e:2x2
jax: 0.10.0
libtpu: 0.0.40
codegen_flags: <defaults>
</compile_context>

<pallas_src>
import functools

import jax
import jax.numpy as jnp
from jax.experimental import pallas as pl
from jax.experimental.pallas import tpu as pltpu


def _round_up(x, m):
    return (x + m - 1) // m * m


def _mlp_kernel(x_ref, w1_ref, b1_ref, w2_ref, b2_ref, w3_ref, b3_ref, o_ref):
    # Three fused matmuls + bias + ReLU. MXU operands may be bf16 (the
    # prepared weights decide); accumulation / bias / ReLU are always f32.
    x = x_ref[...].astype(w1_ref.dtype)          # in-kernel cast (VPU, free)
    h1 = jnp.dot(x, w1_ref[...], preferred_element_type=jnp.float32)
    h1 = jnp.maximum(h1 + b1_ref[...], 0.0)

    h2 = jnp.dot(h1.astype(w2_ref.dtype), w2_ref[...],
                 preferred_element_type=jnp.float32)
    h2 = jnp.maximum(h2 + b2_ref[...], 0.0)

    out = jnp.dot(h2.astype(w3_ref.dtype), w3_ref[...],
                  preferred_element_type=jnp.float32)
    o_ref[...] = (out + b3_ref[...]).astype(o_ref.dtype)


def prepare_params(params, use_bf16=True):
    """One-time preparation of network_basic params for the Pallas kernel.

    Casts weights to the MXU operand dtype (bf16 by default -- native and fast
    on v5e/v6e/v7x); biases stay f32 (the epilogue is f32). Call this ONCE and
    reuse the result across forward calls -- this is what keeps the per-call
    path to a single pallas_call.
    """
    cdt = jnp.bfloat16 if use_bf16 else jnp.float32
    return {
        "w1": params["w1"].astype(cdt),
        "w2": params["w2"].astype(cdt),
        "w3": params["w3"].astype(cdt),
        "b1": params["b1"].astype(jnp.float32),
        "b2": params["b2"].astype(jnp.float32),
        "b3": params["b3"].astype(jnp.float32),
    }


@functools.partial(jax.jit, static_argnames=("block_b", "num_cores"))
def network_basic_forward(x, prepared, block_b=512, num_cores=1):
    """Forward pass of network_basic.

    x:        [B, in_dim] float32
    prepared: output of prepare_params() -- w1 [in_dim,256], w2 [256,256],
              w3 [256,out_dim] (bf16 or f32), b1/b2 [1,256], b3 [1,out_dim] f32.
    num_cores: TensorCores to split small batches across (1 for v5e/v6e,
               2 for v7x). Grid axis is "parallel" so megacore shards it.
    """
    B, in_dim = x.shape
    hidden = prepared["w1"].shape[1]            # 256
    out_dim = prepared["w3"].shape[1]

    # Batch tile: one grid step per TensorCore when the batch fits, capped at
    # block_b for large batches (amortizes ~0.35us/step, longer MXU M runs).
    # 16-row alignment keeps bf16 row packing clean; 8 suffices for f32.
    row_align = 16 if prepared["w1"].dtype == jnp.bfloat16 else 8
    per_step = pl.cdiv(B, max(num_cores, 1))
    bb = min(_round_up(per_step, row_align), block_b)
    grid = (pl.cdiv(B, bb),)                    # ragged last block is fine

    # Weights/biases: constant index_map -> resident across all grid steps.
    weight_spec = lambda shape: pl.BlockSpec(shape, lambda i: (0, 0))

    return pl.pallas_call(
        _mlp_kernel,
        out_shape=jax.ShapeDtypeStruct((B, out_dim), jnp.float32),
        grid_spec=pltpu.PrefetchScalarGridSpec(
            num_scalar_prefetch=0,
            grid=grid,
            in_specs=[
                pl.BlockSpec((bb, in_dim), lambda i: (i, 0)),   # x tile (f32)
                weight_spec((in_dim, hidden)),                   # w1
                weight_spec((1, hidden)),                        # b1
                weight_spec((hidden, hidden)),                   # w2
                weight_spec((1, hidden)),                        # b2
                weight_spec((hidden, out_dim)),                  # w3
                weight_spec((1, out_dim)),                       # b3
            ],
            out_specs=pl.BlockSpec((bb, out_dim), lambda i: (i, 0)),
        ),
        compiler_params=pltpu.CompilerParams(
            dimension_semantics=("parallel",),
        ),
    )(x, prepared["w1"], prepared["b1"], prepared["w2"], prepared["b2"],
      prepared["w3"], prepared["b3"])


def init_params(key, in_dim, out_dim, hidden=256):
    """Deterministic init mirroring the PyTorch module after .initialize():
    xavier_uniform_ weights, default nn.Linear bias init U(-1/sqrt(fan_in), +)."""
    ks = jax.random.split(key, 6)

    def xavier(k, fan_in, fan_out):
        limit = jnp.sqrt(6.0 / (fan_in + fan_out))
        # Stored as [fan_in, fan_out] (transposed vs. PyTorch weight layout).
        return jax.random.uniform(k, (fan_in, fan_out), jnp.float32, -limit, limit)

    def bias(k, fan_in, fan_out):
        bound = 1.0 / jnp.sqrt(fan_in)
        return jax.random.uniform(k, (1, fan_out), jnp.float32, -bound, bound)

    return {
        "w1": xavier(ks[0], in_dim, hidden), "b1": bias(ks[1], in_dim, hidden),
        "w2": xavier(ks[2], hidden, hidden), "b2": bias(ks[3], hidden, hidden),
        "w3": xavier(ks[4], hidden, out_dim), "b3": bias(ks[5], hidden, out_dim),
    }


def _reference_forward(x, p):
    h1 = jnp.maximum(x @ p["w1"] + p["b1"], 0.0)
    h2 = jnp.maximum(h1 @ p["w2"] + p["b2"], 0.0)
    return h2 @ p["w3"] + p["b3"]


if __name__ == "__main__":
    key = jax.random.PRNGKey(0)
    k_x, k_p = jax.random.split(key)

    # SAC-like sizes: state_dim=32, action_dim=8, batch=100 (not a multiple of
    # 8/16 or the block size -> exercises the ragged-block path).
    batch, in_dim, out_dim = 100, 32, 8
    x = jax.random.normal(k_x, (batch, in_dim), jnp.float32)
    params = init_params(k_p, in_dim, out_dim)

    ref = _reference_forward(x, params)

    # f32 MXU-operand path: comparable with the (same-precision) jnp reference.
    prep_f32 = prepare_params(params, use_bf16=False)
    out_f32 = jax.block_until_ready(network_basic_forward(x, prep_f32))
    assert out_f32.shape == (batch, out_dim)
    assert jnp.allclose(out_f32, ref, atol=1e-4, rtol=1e-4), "f32 mismatch vs reference"

    # bf16 MXU-operand path (default, native/fast on v5e/v6e/v7x): f32
    # accumulation, so only operand-rounding error remains -> looser tolerance.
    prep_bf16 = prepare_params(params)          # call once, reuse across steps
    out_bf16 = jax.block_until_ready(network_basic_forward(x, prep_bf16))
    assert out_bf16.shape == (batch, out_dim)
    assert jnp.max(jnp.abs(out_bf16 - ref)) < 5e-2, "bf16 mismatch vs reference"

    # v7x-style 2-TensorCore split (runs fine, just serial, on 1-TC chips).
    out_2c = jax.block_until_ready(network_basic_forward(x, prep_bf16, num_cores=2))
    assert jnp.max(jnp.abs(out_2c - ref)) < 5e-2, "num_cores=2 mismatch vs reference"

    print("KERNEL_OK")
</pallas_src>

<mosaic_0001>
module attributes {stable_mosaic.version = 11 : i64} {
  func.func @_mlp_kernel(%arg0: i32, %arg1: memref<104x32xf32, #tpu.memory_space<vmem>>, %arg2: memref<32x256xf32, #tpu.memory_space<vmem>>, %arg3: memref<1x256xf32, #tpu.memory_space<vmem>>, %arg4: memref<256x256xf32, #tpu.memory_space<vmem>>, %arg5: memref<1x256xf32, #tpu.memory_space<vmem>>, %arg6: memref<256x8xf32, #tpu.memory_space<vmem>>, %arg7: memref<1x8xf32, #tpu.memory_space<vmem>>, %arg8: memref<104x8xf32, #tpu.memory_space<vmem>>) attributes {dimension_semantics = [#tpu.dimension_semantics<parallel>], iteration_bounds = array<i64: 1>, scalar_prefetch = 0 : i64, scratch_operands = 0 : i64, tpu.core_type = #tpu.core_type<tc>, window_params = [{transform_indices = @transform_0, window_bounds = array<i64: 104, 32>}, {pipeline_mode = #tpu.pipeline_mode<synchronous>, transform_indices = @transform_1, window_bounds = array<i64: 32, 256>}, {pipeline_mode = #tpu.pipeline_mode<synchronous>, transform_indices = @transform_2, window_bounds = array<i64: 1, 256>}, {pipeline_mode = #tpu.pipeline_mode<synchronous>, transform_indices = @transform_3, window_bounds = array<i64: 256, 256>}, {pipeline_mode = #tpu.pipeline_mode<synchronous>, transform_indices = @transform_4, window_bounds = array<i64: 1, 256>}, {pipeline_mode = #tpu.pipeline_mode<synchronous>, transform_indices = @transform_5, window_bounds = array<i64: 256, 8>}, {pipeline_mode = #tpu.pipeline_mode<synchronous>, transform_indices = @transform_6, window_bounds = array<i64: 1, 8>}, {transform_indices = @transform_7, window_bounds = array<i64: 104, 8>}]} {
    %c0 = arith.constant 0 : index
    %c0_0 = arith.constant 0 : index
    %0 = vector.load %arg1[%c0, %c0_0] : memref<104x32xf32, #tpu.memory_space<vmem>>, vector<104x32xf32>
    %c0_1 = arith.constant 0 : index
    %c0_2 = arith.constant 0 : index
    %1 = vector.load %arg2[%c0_1, %c0_2] : memref<32x256xf32, #tpu.memory_space<vmem>>, vector<32x256xf32>
    %cst = arith.constant dense<0.000000e+00> : vector<104x256xf32>
    %2 = tpu.matmul %0, %1, %cst {dimension_numbers = #tpu.dot_dimension_numbers<[1], [0], [0], [1], [0, 0, 1, 1], [], []>} : vector<104x32xf32>, vector<32x256xf32>, vector<104x256xf32> -> vector<104x256xf32>
    %c0_3 = arith.constant 0 : index
    %c0_4 = arith.constant 0 : index
    %3 = vector.load %arg3[%c0_3, %c0_4] : memref<1x256xf32, #tpu.memory_space<vmem>>, vector<1x256xf32>
    %4 = vector.broadcast %3 : vector<1x256xf32> to vector<104x256xf32>
    %5 = arith.addf %2, %4 : vector<104x256xf32>
    %cst_5 = arith.constant 0.000000e+00 : f32
    %6 = vector.broadcast %cst_5 : f32 to vector<104x256xf32>
    %7 = arith.maximumf %5, %6 : vector<104x256xf32>
    %c0_6 = arith.constant 0 : index
    %c0_7 = arith.constant 0 : index
    %8 = vector.load %arg4[%c0_6, %c0_7] : memref<256x256xf32, #tpu.memory_space<vmem>>, vector<256x256xf32>
    %cst_8 = arith.constant dense<0.000000e+00> : vector<104x256xf32>
    %9 = tpu.matmul %7, %8, %cst_8 {dimension_numbers = #tpu.dot_dimension_numbers<[1], [0], [0], [1], [0, 0, 1, 1], [], []>} : vector<104x256xf32>, vector<256x256xf32>, vector<104x256xf32> -> vector<104x256xf32>
    %c0_9 = arith.constant 0 : index
    %c0_10 = arith.constant 0 : index
    %10 = vector.load %arg5[%c0_9, %c0_10] : memref<1x256xf32, #tpu.memory_space<vmem>>, vector<1x256xf32>
    %11 = vector.broadcast %10 : vector<1x256xf32> to vector<104x256xf32>
    %12 = arith.addf %9, %11 : vector<104x256xf32>
    %cst_11 = arith.constant 0.000000e+00 : f32
    %13 = vector.broadcast %cst_11 : f32 to vector<104x256xf32>
    %14 = arith.maximumf %12, %13 : vector<104x256xf32>
    %c0_12 = arith.constant 0 : index
    %c0_13 = arith.constant 0 : index
    %15 = vector.load %arg6[%c0_12, %c0_13] : memref<256x8xf32, #tpu.memory_space<vmem>>, vector<256x8xf32>
    %cst_14 = arith.constant dense<0.000000e+00> : vector<104x8xf32>
    %16 = tpu.matmul %14, %15, %cst_14 {dimension_numbers = #tpu.dot_dimension_numbers<[1], [0], [0], [1], [0, 0, 1, 1], [], []>} : vector<104x256xf32>, vector<256x8xf32>, vector<104x8xf32> -> vector<104x8xf32>
    %c0_15 = arith.constant 0 : index
    %c0_16 = arith.constant 0 : index
    %17 = vector.load %arg7[%c0_15, %c0_16] : memref<1x8xf32, #tpu.memory_space<vmem>>, vector<1x8xf32>
    %18 = vector.broadcast %17 : vector<1x8xf32> to vector<104x8xf32>
    %19 = arith.addf %16, %18 : vector<104x8xf32>
    %c0_17 = arith.constant 0 : index
    %c0_18 = arith.constant 0 : index
    %20 = vector.load %arg8[%c0_17, %c0_18] : memref<104x8xf32, #tpu.memory_space<vmem>>, vector<104x8xf32>
    tpu.vector_store %arg8[%c0_17, %c0_18], %19 {strides = array<i32>} : memref<104x8xf32, #tpu.memory_space<vmem>>, vector<104x8xf32>,
    return
  }
  func.func @transform_0(%arg0: i32) -> (i32, i32) {
    %c0_i32 = arith.constant 0 : i32
    %c0_i32_0 = arith.constant 0 : i32
    return %arg0, %c0_i32 : i32, i32
  }
  func.func @transform_1(%arg0: i32) -> (i32, i32) {
    %c0_i32 = arith.constant 0 : i32
    %c0_i32_0 = arith.constant 0 : i32
    %c0_i32_1 = arith.constant 0 : i32
    return %c0_i32, %c0_i32_0 : i32, i32
  }
  func.func @transform_2(%arg0: i32) -> (i32, i32) {
    %c0_i32 = arith.constant 0 : i32
    %c0_i32_0 = arith.constant 0 : i32
    %c0_i32_1 = arith.constant 0 : i32
    return %c0_i32, %c0_i32_0 : i32, i32
  }
  func.func @transform_3(%arg0: i32) -> (i32, i32) {
    %c0_i32 = arith.constant 0 : i32
    %c0_i32_0 = arith.constant 0 : i32
    %c0_i32_1 = arith.constant 0 : i32
    return %c0_i32, %c0_i32_0 : i32, i32
  }
  func.func @transform_4(%arg0: i32) -> (i32, i32) {
    %c0_i32 = arith.constant 0 : i32
    %c0_i32_0 = arith.constant 0 : i32
    %c0_i32_1 = arith.constant 0 : i32
    return %c0_i32, %c0_i32_0 : i32, i32
  }
  func.func @transform_5(%arg0: i32) -> (i32, i32) {
    %c0_i32 = arith.constant 0 : i32
    %c0_i32_0 = arith.constant 0 : i32
    %c0_i32_1 = arith.constant 0 : i32
    return %c0_i32, %c0_i32_0 : i32, i32
  }
  func.func @transform_6(%arg0: i32) -> (i32, i32) {
    %c0_i32 = arith.constant 0 : i32
    %c0_i32_0 = arith.constant 0 : i32
    %c0_i32_1 = arith.constant 0 : i32
    return %c0_i32, %c0_i32_0 : i32, i32
  }
  func.func @transform_7(%arg0: i32) -> (i32, i32) {
    %c0_i32 = arith.constant 0 : i32
    %c0_i32_0 = arith.constant 0 : i32
    return %arg0, %c0_i32 : i32, i32
  }
}

</mosaic_0001>

<bundles_post_ra>
// kernel: network_basic_forward.1
= control target key start
LH: loop header
LB: loop body
LE: loop exit
PB: predicated region body
PF: predicated region fallthrough
CT: control target
= control target key end

     0   :  { %12 = vsyncpa [#allocation3], 0  ;;  %s822_s27 = smov [#allocation2]   ;;  %s823_s29 = smov 256   ;;  %s1189_s0 = inlined_call_operand.vmem [shape: f32[100,32], index: 0, kind: input, shape index: {}]   ;;  %s1190_s1 = inlined_call_operand.vmem [shape: f32[32,256], index: 1, kind: input, shape index: {}]   ;;  %s1191_s2 = inlined_call_operand.vmem [shape: f32[1,256], index: 2, kind: input, shape index: {}]   ;;  %s1192_s3 = inlined_call_operand.hbm [shape: f32[256,256], index: 3, kind: input, shape index: {}]   ;;  %s1193_s4 = inlined_call_operand.vmem [shape: f32[1,256], index: 4, kind: input, shape index: {}]   ;;  %s1194_s5 = inlined_call_operand.vmem [shape: f32[256,8], index: 5, kind: input, shape index: {}]   ;;  %s1195_s6 = inlined_call_operand.vmem [shape: f32[1,8], index: 6, kind: input, shape index: {}]   ;;  %s1196_s7 = inlined_call_operand.vmem [shape: f32[100,8], index: 7, kind: output, shape index: {}]  }
   0x1   :  { %s23_s26 = sshll.u32 %s1192_s3, 4  ;;  %s25_s28 = sshll.u32 %s822_s27, 4  ;;  %s24_s26 = int_to_ptr.hbm [resolvable:$true] %s23_s26  ;;  %s26_s28 = int_to_ptr.vmem [resolvable:$true] %s25_s28 }
   0x2   :  { %s824_s30 = smov 16  }
   0x3   :  { %31 = dma.hbm_to_vmem [thread:$0]  %s24_s26, 8192, %s26_s28, [#allocation3], %s823_s29, %s823_s29, %s824_s30  }
   0x4   :  { %820 = dma.done.wait [#allocation3], 8192  }
   0x5   :  { %821 = vsyncadd [#allocation3], 4294959104  ;;  %v61_v0 = vld [vmem:[%s1190_s1 + $0x30] sm:$0xff]  ;;  %v59_v1 = vld [vmem:[%s1190_s1 + $0x20] sm:$0xff]  ;;  %vm69_vm0 = vcmask 261120   ;;  %vm715_vm1 = vcmask 64512  }
   0x6   :  { %v62_v2 = vld [vmem:[%s1190_s1 + $0x38] sm:$0xff]  ;;  %121 = vmatpush.msra.mxu0 %v61_v0  ;;  %v60_v3 = vld [vmem:[%s1190_s1 + $0x28] sm:$0xff]  ;;  %v57_v4 = vld [vmem:[%s1190_s1 + $0x10] sm:$0xff] }
   0x7   :  { %177 = vmatpush.msra.mxu1 %v62_v2  ;;  %v58_v5 = vld [vmem:[%s1190_s1 + $0x18] sm:$0xff]  ;;  %v55_v6 = vld [vmem:[%s1190_s1] sm:$0xff]  ;;  %v56_v7 = vld [vmem:[%s1190_s1 + $0x8] sm:$0xff] }
   0x8   :  { %122 = vmatpush.msra.mxu0 %v59_v1  ;;  %v42_v8 = vld [vmem:[%s1189_s0] sm:$0xff]  ;;  %v278_v9 = vld [vmem:[#allocation2 + $0xf8] sm:$0xff]  ;;  %v43_v11 = vld [vmem:[%s1189_s0 + $0x8] sm:$0xff] }
   0x9   :  { %178 = vmatpush.msra.mxu1 %v60_v3  ;;  %v310_v10 = vld [vmem:[#allocation2 + $0x1f8] sm:$0xff]  ;;  %v276_v12 = vld [vmem:[#allocation2 + $0xe8] sm:$0xff]  ;;  %v44_v15 = vld [vmem:[%s1189_s0 + $0x10] sm:$0xff] }
   0xa   :  { %123 = vmatpush.msra.mxu0 %v57_v4  ;;  %v308_v13 = vld [vmem:[#allocation2 + $0x1e8] sm:$0xff]  ;;  %v274_v14 = vld [vmem:[#allocation2 + $0xd8] sm:$0xff]  ;;  %v46_v22 = vld [vmem:[%s1189_s0 + $0x20] sm:$0xff] }
   0xb   :  { %179 = vmatpush.msra.mxu1 %v58_v5  ;;  %v306_v16 = vld [vmem:[#allocation2 + $0x1d8] sm:$0xff]  ;;  %v272_v17 = vld [vmem:[#allocation2 + $0xc8] sm:$0xff]  ;;  %v48_v28 = vld [vmem:[%s1189_s0 + $0x30] sm:$0xff] }
   0xc   :  { %124 = vmatpush.msra.mxu0 %v55_v6  ;;  %v45_v18 = vld [vmem:[%s1189_s0 + $0x18] sm:$0xff]  ;;  %v304_v19 = vld [vmem:[#allocation2 + $0x1c8] sm:$0xff]  ;;  %v50_v36 = vld [vmem:[%s1189_s0 + $0x40] sm:$0xff] }
   0xd   :  { %180 = vmatpush.msra.mxu1 %v56_v7  ;;  %734 = vmatmul.msk.f32.vlgmr.msra.gmra.mxu0 %vm69_vm0, %v42_v8  ;;  %v270_v20 = vld [vmem:[#allocation2 + $0xb8] sm:$0xff]  ;;  %v268_v23 = vld [vmem:[#allocation2 + $0xa8] sm:$0xff]  ;;  %v277_v37 = vld [vmem:[#allocation2 + $0xf0] sm:$0xff] }
   0xe   :  { %747 = vmatmul.msk.f32.vlgmr.msra.gmra.mxu1 %vm69_vm0, %v42_v8  ;;  %429 = vmatpush.msrb.mxu0 %v278_v9  ;;  %v302_v21 = vld [vmem:[#allocation2 + $0x1b8] sm:$0xff]  ;;  %v300_v24 = vld [vmem:[#allocation2 + $0x1a8] sm:$0xff]  ;;  %v275_v39 = vld [vmem:[#allocation2 + $0xe0] sm:$0xff] }
   0xf   :  { %485 = vmatpush.msrb.mxu1 %v310_v10  ;;  %v47_v25 = vld [vmem:[%s1189_s0 + $0x28] sm:$0xff]  ;;  %v266_v26 = vld [vmem:[#allocation2 + $0x98] sm:$0xff]  ;;  %317 = vmatpush.msra.mxu2 %v277_v37  ;;  %v309_v40 = vld [vmem:[#allocation2 + $0x1f0] sm:$0xff] }
  0x10   :  { %430 = vmatpush.msrb.mxu0 %v276_v12  ;;  %v298_v27 = vld [vmem:[#allocation2 + $0x198] sm:$0xff]  ;;  %v264_v29 = vld [vmem:[#allocation2 + $0x88] sm:$0xff]  ;;  %373 = vmatpush.msra.mxu3 %v309_v40  ;;  %v273_v42 = vld [vmem:[#allocation2 + $0xd0] sm:$0xff] }
  0x11   :  { %486 = vmatpush.msrb.mxu1 %v308_v13  ;;  %v296_v30 = vld [vmem:[#allocation2 + $0x188] sm:$0xff]  ;;  %v262_v31 = vld [vmem:[#allocation2 + $0x78] sm:$0xff]  ;;  %v307_v43 = vld [vmem:[#allocation2 + $0x1e0] sm:$0xff]  ;;  %318 = vmatpush.msra.mxu2 %v275_v39 }
  0x12   :  { %431 = vmatpush.msrb.mxu0 %v274_v14  ;;  %v49_v32 = vld [vmem:[%s1189_s0 + $0x38] sm:$0xff]  ;;  %v260_v34 = vld [vmem:[#allocation2 + $0x68] sm:$0xff]  ;;  %v305_v44 = vld [vmem:[#allocation2 + $0x1d0] sm:$0xff]  ;;  %374 = vmatpush.msra.mxu3 %v307_v43 }
  0x13   :  { %487 = vmatpush.msrb.mxu1 %v306_v16  ;;  %v294_v33 = vld [vmem:[#allocation2 + $0x178] sm:$0xff]  ;;  %v292_v35 = vld [vmem:[#allocation2 + $0x168] sm:$0xff]  ;;  %v271_v46 = vld [vmem:[#allocation2 + $0xc0] sm:$0xff]  ;;  %319 = vmatpush.msra.mxu2 %v273_v42 }
  0x14   :  { %432 = vmatpush.msrb.mxu0 %v272_v17  ;;  %v258_v38 = vld [vmem:[#allocation2 + $0x58] sm:$0xff]  ;;  %v256_v45 = vld [vmem:[#allocation2 + $0x48] sm:$0xff]  ;;  %375 = vmatpush.msra.mxu3 %v305_v44  ;;  %v269_v50 = vld [vmem:[#allocation2 + $0xb0] sm:$0xff] }
  0x15   :  { %735 = vmatmul.msk.f32.gmra.mxu0 %vm69_vm0, %v43_v11  ;;  %488 = vmatpush.msrb.mxu1 %v304_v19  ;;  %v290_v41 = vld [vmem:[#allocation2 + $0x158] sm:$0xff]  ;;  %v288_v47 = vld [vmem:[#allocation2 + $0x148] sm:$0xff]  ;;  %v303_v51 = vld [vmem:[#allocation2 + $0x1c0] sm:$0xff] }
  0x16   :  { %748 = vmatmul.msk.f32.gmra.mxu1 %vm69_vm0, %v43_v11  ;;  %433 = vmatpush.msrb.mxu0 %v270_v20  ;;  %v51_v48 = vld [vmem:[%s1189_s0 + $0x48] sm:$0xff]  ;;  %v254_v49 = vld [vmem:[#allocation2 + $0x38] sm:$0xff]  ;;  %v267_v53 = vld [vmem:[#allocation2 + $0xa0] sm:$0xff] }
  0x17   :  { %489 = vmatpush.msrb.mxu1 %v302_v21  ;;  %v286_v52 = vld [vmem:[#allocation2 + $0x138] sm:$0xff]  ;;  %320 = vmatpush.msra.mxu2 %v271_v46  ;;  %v301_v54 = vld [vmem:[#allocation2 + $0x1b0] sm:$0xff]  ;;  %v252_v55 = vld [vmem:[#allocation2 + $0x28] sm:$0xff] }
  0x18   :  { %434 = vmatpush.msrb.mxu0 %v268_v23  ;;  %376 = vmatpush.msra.mxu3 %v303_v51  ;;  %v265_v56 = vld [vmem:[#allocation2 + $0x90] sm:$0xff]  ;;  %v299_v57 = vld [vmem:[#allocation2 + $0x1a0] sm:$0xff]  ;;  %v284_v58 = vld [vmem:[#allocation2 + $0x128] sm:$0xff] }
  0x19   :  { %490 = vmatpush.msrb.mxu1 %v300_v24  ;;  %321 = vmatpush.msra.mxu2 %v269_v50  ;;  %v263_v59 = vld [vmem:[#allocation2 + $0x80] sm:$0xff]  ;;  %v297_v60 = vld [vmem:[#allocation2 + $0x190] sm:$0xff]  ;;  %v53_v6 = vld [vmem:[%s1189_s0 + $0x58] sm:$0xff] }
  0x1a   :  { %435 = vmatpush.msrb.mxu0 %v266_v26  ;;  %377 = vmatpush.msra.mxu3 %v301_v54  ;;  %v52_v61 = vld [vmem:[%s1189_s0 + $0x50] sm:$0xff]  ;;  %v295_v63 = vld [vmem:[#allocation2 + $0x180] sm:$0xff]  ;;  %v250_v12 = vld [vmem:[#allocation2 + $0x18] sm:$0xff] }
  0x1b   :  { %491 = vmatpush.msrb.mxu1 %v298_v27  ;;  %322 = vmatpush.msra.mxu2 %v267_v53  ;;  %v261_v62 = vld [vmem:[#allocation2 + $0x70] sm:$0xff]  ;;  %v259_v0 = vld [vmem:[#allocation2 + $0x60] sm:$0xff]  ;;  %v280_v20 = vld [vmem:[#allocation2 + $0x108] sm:$0xff] }
  0x1c   :  { %436 = vmatpush.msrb.mxu0 %v264_v29  ;;  %378 = vmatpush.msra.mxu3 %v299_v57  ;;  %v293_v1 = vld [vmem:[#allocation2 + $0x170] sm:$0xff]  ;;  %v291_v3 = vld [vmem:[#allocation2 + $0x160] sm:$0xff]  ;;  %v598_v43 = vld [vmem:[%s1194_s5 + $0xf8] sm:$0xff] }
  0x1d   :  { %736 = vmatmul.msk.f32.gmra.mxu0 %vm69_vm0, %v44_v15  ;;  %492 = vmatpush.msrb.mxu1 %v296_v30  ;;  %v257_v2 = vld [vmem:[#allocation2 + $0x50] sm:$0xff]  ;;  %v255_v4 = vld [vmem:[#allocation2 + $0x40] sm:$0xff]  ;;  %v596_v53 = vld [vmem:[%s1194_s5 + $0xe8] sm:$0xff] }
  0x1e   :  { %749 = vmatmul.msk.f32.gmra.mxu1 %vm69_vm0, %v44_v15  ;;  %437 = vmatpush.msrb.mxu0 %v262_v31  ;;  %v289_v5 = vld [vmem:[#allocation2 + $0x150] sm:$0xff]  ;;  %v287_v8 = vld [vmem:[#allocation2 + $0x140] sm:$0xff]  ;;  %v282_v15 = vld [vmem:[#allocation2 + $0x118] sm:$0xff] }
  0x1f   :  { %493 = vmatpush.msrb.mxu1 %v294_v33  ;;  %323 = vmatpush.msra.mxu2 %v265_v56  ;;  %v253_v7 = vld [vmem:[#allocation2 + $0x30] sm:$0xff]  ;;  %v251_v9 = vld [vmem:[#allocation2 + $0x20] sm:$0xff] }
  0x20   :  { %438 = vmatpush.msrb.mxu0 %v260_v34  ;;  %379 = vmatpush.msra.mxu3 %v297_v60  ;;  %v285_v10 = vld [vmem:[#allocation2 + $0x130] sm:$0xff]  ;;  %v54_v11 = vld [vmem:[%s1189_s0 + $0x60] sm:$0xff] }
  0x21   :  { %494 = vmatpush.msrb.mxu1 %v292_v35  ;;  %324 = vmatpush.msra.mxu2 %v263_v59  ;;  %v249_v13 = vld [vmem:[#allocation2 + $0x10] sm:$0xff]  ;;  %v283_v14 = vld [vmem:[#allocation2 + $0x120] sm:$0xff] }
  0x22   :  { %439 = vmatpush.msrb.mxu0 %v258_v38  ;;  %380 = vmatpush.msra.mxu3 %v295_v63  ;;  %v247_v16 = vld [vmem:[#allocation2] sm:$0xff]  ;;  %v281_v17 = vld [vmem:[#allocation2 + $0x110] sm:$0xff] }
  0x23   :  { %495 = vmatpush.msrb.mxu1 %v290_v41  ;;  %325 = vmatpush.msra.mxu2 %v261_v62  ;;  %v279_v19 = vld [vmem:[#allocation2 + $0x100] sm:$0xff]  ;;  %v581_v44 = vld [vmem:[%s1194_s5 + $0x70] sm:$0xff] }
  0x24   :  { %440 = vmatpush.msrb.mxu0 %v256_v45  ;;  %381 = vmatpush.msra.mxu3 %v293_v1  ;;  %v63_v21 = vld [vmem:[%s1191_s2] sm:$0x3]  ;;  %v597_v51 = vld [vmem:[%s1194_s5 + $0xf0] sm:$0xff] }
  0x25   :  { %737 = vmatmul.msk.f32.gmra.mxu0 %vm69_vm0, %v45_v18  ;;  %496 = vmatpush.msrb.mxu1 %v288_v47  ;;  %v962_v23 = vperm.slane %v63_v21, 1  ;;  %v579_v60 = vld [vmem:[%s1194_s5 + $0x60] sm:$0xff] }
  0x26   :  { %750 = vmatmul.msk.f32.gmra.mxu1 %vm69_vm0, %v45_v18  ;;  %441 = vmatpush.msrb.mxu0 %v254_v49  ;;  %v248_v18 = vld [vmem:[#allocation2 + $0x8] sm:$0xff] }
  0x27   :  { %497 = vmatpush.msrb.mxu1 %v286_v52  ;;  %326 = vmatpush.msra.mxu2 %v259_v0  ;;  %v580_v52 = vld [vmem:[%s1194_s5 + $0x68] sm:$0xff] }
  0x28   :  { %442 = vmatpush.msrb.mxu0 %v252_v55  ;;  %382 = vmatpush.msra.mxu3 %v291_v3 }
  0x29   :  { %498 = vmatpush.msrb.mxu1 %v284_v58  ;;  %327 = vmatpush.msra.mxu2 %v257_v2 }
  0x2a   :  { %383 = vmatpush.msra.mxu3 %v289_v5  ;;  %443 = vmatpush.msrb.mxu0 %v250_v12  ;;  %v594_v5 = vld [vmem:[%s1194_s5 + $0xd8] sm:$0xff]  ;;  %v577_v12 = vld [vmem:[%s1194_s5 + $0x50] sm:$0xff] }
  0x2b   :  { %328 = vmatpush.msra.mxu2 %v255_v4  ;;  %499 = vmatpush.msrb.mxu1 %v282_v15  ;;  %v578_v4 = vld [vmem:[%s1194_s5 + $0x58] sm:$0xff] }
  0x2c   :  { %384 = vmatpush.msra.mxu3 %v287_v8  ;;  %444 = vmatpush.msrb.mxu0 %v248_v18 }
  0x2d   :  { %738 = vmatmul.msk.f32.gmra.mxu0 %vm69_vm0, %v46_v22  ;;  %329 = vmatpush.msra.mxu2 %v253_v7 }
  0x2e   :  { %751 = vmatmul.msk.f32.gmra.mxu1 %vm69_vm0, %v46_v22  ;;  %385 = vmatpush.msra.mxu3 %v285_v10  ;;  %v960_v22 = vperm.slane %v63_v21, 0  ;;  %v592_v21 = vld [vmem:[%s1194_s5 + $0xc8] sm:$0xff] }
  0x2f   :  { %330 = vmatpush.msra.mxu2 %v251_v9  ;;  %500 = vmatpush.msrb.mxu1 %v280_v20 }
  0x30   :  { %386 = vmatpush.msra.mxu3 %v283_v14  ;;  %v576_v14 = vld [vmem:[%s1194_s5 + $0x48] sm:$0xff] }
  0x31   :  { %331 = vmatpush.msra.mxu2 %v249_v13  ;;  %659 = vmatpush.msra.mxu1 %v598_v43  ;;  %v593_v13 = vld [vmem:[%s1194_s5 + $0xd0] sm:$0xff] }
  0x32   :  { %387 = vmatpush.msra.mxu3 %v281_v17 }
  0x33   :  { %332 = vmatpush.msra.mxu2 %v247_v16  ;;  %660 = vmatpush.msra.mxu1 %v597_v51 }
  0x34   :  { %388 = vmatpush.msra.mxu3 %v279_v19 }
  0x35   :  { %739 = vmatmul.msk.f32.gmra.mxu0 %vm69_vm0, %v47_v25  ;;  %661 = vmatpush.msra.mxu1 %v596_v53 }
  0x36   :  { %752 = vmatmul.msk.f32.gmra.mxu1 %vm69_vm0, %v47_v25  ;;  %776 = vmatpush.msrb.mxu3 %v598_v43 }
  0x38   :  { %777 = vmatpush.msrb.mxu3 %v597_v51 }
  0x3a   :  { %778 = vmatpush.msrb.mxu3 %v596_v53 }
  0x3d   :  { %740 = vmatmul.msk.f32.gmra.mxu0 %vm69_vm0, %v48_v28 }
  0x3e   :  { %753 = vmatmul.msk.f32.gmra.mxu1 %vm69_vm0, %v48_v28 }
  0x45   :  { %741 = vmatmul.msk.f32.gmra.mxu0 %vm69_vm0, %v49_v32 }
  0x46   :  { %754 = vmatmul.msk.f32.gmra.mxu1 %vm69_vm0, %v49_v32 }
  0x4d   :  { %742 = vmatmul.msk.f32.gmra.mxu0 %vm69_vm0, %v50_v36 }
  0x4e   :  { %755 = vmatmul.msk.f32.gmra.mxu1 %vm69_vm0, %v50_v36  ;;  %v582_v36 = vld [vmem:[%s1194_s5 + $0x78] sm:$0xff] }
  0x4f   :  { %760 = vmatpush.msrb.mxu2 %v582_v36  ;;  %603 = vmatpush.msra.mxu0 %v582_v36  ;;  %v572_v36 = vld [vmem:[%s1194_s5 + $0x28] sm:$0xff] }
  0x51   :  { %761 = vmatpush.msrb.mxu2 %v581_v44  ;;  %604 = vmatpush.msra.mxu0 %v581_v44 }
  0x53   :  { %762 = vmatpush.msrb.mxu2 %v580_v52  ;;  %605 = vmatpush.msra.mxu0 %v580_v52 }
  0x55   :  { %743 = vmatmul.msk.f32.gmra.mxu0 %vm69_vm0, %v51_v48  ;;  %763 = vmatpush.msrb.mxu2 %v579_v60 }
  0x56   :  { %756 = vmatmul.msk.f32.gmra.mxu1 %vm69_vm0, %v51_v48  ;;  %606 = vmatpush.msra.mxu0 %v579_v60 }
  0x57   :  { %764 = vmatpush.msrb.mxu2 %v578_v4 }
  0x58   :  { %607 = vmatpush.msra.mxu0 %v578_v4  ;;  %v568_v4 = vld [vmem:[%s1194_s5 + $0x8] sm:$0xff] }
  0x59   :  { %765 = vmatpush.msrb.mxu2 %v577_v12 }
  0x5a   :  { %608 = vmatpush.msra.mxu0 %v577_v12 }
  0x5b   :  { %766 = vmatpush.msrb.mxu2 %v576_v14 }
  0x5c   :  { %609 = vmatpush.msra.mxu0 %v576_v14 }
  0x5d   :  { %744 = vmatmul.msk.f32.gmra.mxu0 %vm69_vm0, %v52_v61 }
  0x5e   :  { %757 = vmatmul.msk.f32.gmra.mxu1 %vm69_vm0, %v52_v61  ;;  %v595_v61 = vld [vmem:[%s1194_s5 + $0xe0] sm:$0xff] }
  0x5f   :  { %779 = vmatpush.msrb.mxu3 %v595_v61  ;;  %662 = vmatpush.msra.mxu1 %v595_v61 }
  0x61   :  { %780 = vmatpush.msrb.mxu3 %v594_v5  ;;  %663 = vmatpush.msra.mxu1 %v594_v5  ;;  %v567_v5 = vld [vmem:[%s1194_s5] sm:$0xff] }
  0x63   :  { %781 = vmatpush.msrb.mxu3 %v593_v13  ;;  %664 = vmatpush.msra.mxu1 %v593_v13 }
  0x65   :  { %745 = vmatmul.msk.f32.gmra.mxu0 %vm69_vm0, %v53_v6  ;;  %782 = vmatpush.msrb.mxu3 %v592_v21 }
  0x66   :  { %758 = vmatmul.msk.f32.gmra.mxu1 %vm69_vm0, %v53_v6 }
  0x67   :  { %665 = vmatpush.msra.mxu1 %v592_v21 }
  0x6d   :  { %746 = vmatmul.msk.f32.gmra.mxu0 %vm69_vm0, %v54_v11 }
  0x6e   :  { %759 = vmatmul.msk.f32.gmra.mxu1 %vm69_vm0, %v54_v11 }
  0x8a   :  { %v126_v24 = vpop.f32.mrf.mxu0 }
  0x8b   :  { %v182_v25 = vpop.f32.mrf.mxu1  ;;  %v127_v26 = vadd.f32 %v126_v24, %v960_v22  ;;  %v575_v24 = vld [vmem:[%s1194_s5 + $0x40] sm:$0xff] }
  0x8c   :  { %v183_v27 = vadd.f32 %v182_v25, %v962_v23  ;;  %v591_v25 = vld [vmem:[%s1194_s5 + $0xc0] sm:$0xff]  ;;  %767 = vmatpush.msrb.mxu2 %v575_v24  ;;  %610 = vmatpush.msra.mxu0 %v575_v24 }
  0x8d   :  { %v221_v28 = vmax.f32 %v127_v26, 0.0  ;;  %783 = vmatpush.msrb.mxu3 %v591_v25  ;;  %666 = vmatpush.msra.mxu1 %v591_v25 }
  0x8e   :  { %v222_v29 = vmax.f32 %v183_v27, 0.0 }
  0x8f   :  { %333 = vmatmul.f32.vlgmr.msra.gmra.mxu2 %v221_v28  ;;  %445 = vmatmul.f32.vlgmr.msrb.gmra.mxu0 %v221_v28 }
  0x90   :  { %389 = vmatmul.f32.vlgmr.msra.gmra.mxu3 %v222_v29  ;;  %501 = vmatmul.f32.vlgmr.msrb.gmra.mxu1 %v222_v29 }
  0x92   :  { %v129_v30 = vpop.f32.mrf.mxu0 }
  0x93   :  { %v185_v31 = vpop.f32.mrf.mxu1  ;;  %v130_v32 = vadd.f32 %v129_v30, %v960_v22 }
  0x94   :  { %v186_v33 = vadd.f32 %v185_v31, %v962_v23 }
  0x95   :  { %v223_v34 = vmax.f32 %v130_v32, 0.0  ;;  %v574_v32 = vld [vmem:[%s1194_s5 + $0x38] sm:$0xff] }
  0x96   :  { %v224_v35 = vmax.f32 %v186_v33, 0.0  ;;  %768 = vmatpush.msrb.mxu2 %v574_v32  ;;  %611 = vmatpush.msra.mxu0 %v574_v32  ;;  %v590_v33 = vld [vmem:[%s1194_s5 + $0xb8] sm:$0xff] }
  0x97   :  { %336 = vmatmul.f32.gmra.mxu2 %v223_v34  ;;  %448 = vmatmul.f32.gmra.mxu0 %v223_v34  ;;  %v573_v34 = vld [vmem:[%s1194_s5 + $0x30] sm:$0xff] }
  0x98   :  { %392 = vmatmul.f32.gmra.mxu3 %v224_v35  ;;  %504 = vmatmul.f32.gmra.mxu1 %v224_v35  ;;  %v589_v35 = vld [vmem:[%s1194_s5 + $0xb0] sm:$0xff] }
  0x99   :  { %784 = vmatpush.msrb.mxu3 %v590_v33  ;;  %769 = vmatpush.msrb.mxu2 %v573_v34 }
  0x9a   :  { %v132_v37 = vpop.f32.mrf.mxu0  ;;  %667 = vmatpush.msra.mxu1 %v590_v33  ;;  %612 = vmatpush.msra.mxu0 %v573_v34 }
  0x9b   :  { %v188_v38 = vpop.f32.mrf.mxu1  ;;  %v133_v39 = vadd.f32 %v132_v37, %v960_v22  ;;  %785 = vmatpush.msrb.mxu3 %v589_v35  ;;  %770 = vmatpush.msrb.mxu2 %v572_v36 }
  0x9c   :  { %v189_v40 = vadd.f32 %v188_v38, %v962_v23  ;;  %668 = vmatpush.msra.mxu1 %v589_v35  ;;  %613 = vmatpush.msra.mxu0 %v572_v36 }
  0x9d   :  { %v225_v41 = vmax.f32 %v133_v39, 0.0 }
  0x9e   :  { %v226_v42 = vmax.f32 %v189_v40, 0.0 }
  0x9f   :  { %339 = vmatmul.f32.gmra.mxu2 %v225_v41  ;;  %451 = vmatmul.f32.gmra.mxu0 %v225_v41  ;;  %v588_v41 = vld [vmem:[%s1194_s5 + $0xa8] sm:$0xff] }
  0xa0   :  { %395 = vmatmul.f32.gmra.mxu3 %v226_v42  ;;  %507 = vmatmul.f32.gmra.mxu1 %v226_v42  ;;  %v571_v42 = vld [vmem:[%s1194_s5 + $0x20] sm:$0xff] }
  0xa1   :  { %786 = vmatpush.msrb.mxu3 %v588_v41  ;;  %771 = vmatpush.msrb.mxu2 %v571_v42 }
  0xa2   :  { %v135_v45 = vpop.f32.mrf.mxu0  ;;  %669 = vmatpush.msra.mxu1 %v588_v41  ;;  %614 = vmatpush.msra.mxu0 %v571_v42 }
  0xa3   :  { %v191_v46 = vpop.f32.mrf.mxu1  ;;  %v136_v47 = vadd.f32 %v135_v45, %v960_v22  ;;  %v587_v45 = vld [vmem:[%s1194_s5 + $0xa0] sm:$0xff] }
  0xa4   :  { %v192_v48 = vadd.f32 %v191_v46, %v962_v23  ;;  %v570_v46 = vld [vmem:[%s1194_s5 + $0x18] sm:$0xff]  ;;  %787 = vmatpush.msrb.mxu3 %v587_v45  ;;  %670 = vmatpush.msra.mxu1 %v587_v45 }
  0xa5   :  { %v227_v49 = vmax.f32 %v136_v47, 0.0  ;;  %772 = vmatpush.msrb.mxu2 %v570_v46  ;;  %v586_v47 = vld [vmem:[%s1194_s5 + $0x98] sm:$0xff]  ;;  %615 = vmatpush.msra.mxu0 %v570_v46 }
  0xa6   :  { %v228_v50 = vmax.f32 %v192_v48, 0.0  ;;  %788 = vmatpush.msrb.mxu3 %v586_v47  ;;  %671 = vmatpush.msra.mxu1 %v586_v47 }
  0xa7   :  { %342 = vmatmul.f32.gmra.mxu2 %v227_v49  ;;  %454 = vmatmul.f32.gmra.mxu0 %v227_v49 }
  0xa8   :  { %398 = vmatmul.f32.gmra.mxu3 %v228_v50  ;;  %510 = vmatmul.f32.gmra.mxu1 %v228_v50 }
  0xaa   :  { %v138_v54 = vpop.f32.mrf.mxu0 }
  0xab   :  { %v194_v55 = vpop.f32.mrf.mxu1  ;;  %v139_v56 = vadd.f32 %v138_v54, %v960_v22 }
  0xac   :  { %v195_v57 = vadd.f32 %v194_v55, %v962_v23 }
  0xad   :  { %v229_v58 = vmax.f32 %v139_v56, 0.0 }
  0xae   :  { %v230_v59 = vmax.f32 %v195_v57, 0.0 }
  0xaf   :  { %345 = vmatmul.f32.gmra.mxu2 %v229_v58  ;;  %457 = vmatmul.f32.gmra.mxu0 %v229_v58 }
  0xb0   :  { %401 = vmatmul.f32.gmra.mxu3 %v230_v59  ;;  %513 = vmatmul.f32.gmra.mxu1 %v230_v59 }
  0xb2   :  { %v141_v62 = vpop.f32.mrf.mxu0 }
  0xb3   :  { %v197_v63 = vpop.f32.mrf.mxu1  ;;  %v142_v0 = vadd.f32 %v141_v62, %v960_v22 }
  0xb4   :  { %v198_v1 = vadd.f32 %v197_v63, %v962_v23 }
  0xb5   :  { %v231_v2 = vmax.f32 %v142_v0, 0.0 }
  0xb6   :  { %v232_v3 = vmax.f32 %v198_v1, 0.0 }
  0xb7   :  { %348 = vmatmul.f32.gmra.mxu2 %v231_v2  ;;  %460 = vmatmul.f32.gmra.mxu0 %v231_v2  ;;  %v585_v2 = vld [vmem:[%s1194_s5 + $0x90] sm:$0xff] }
  0xb8   :  { %404 = vmatmul.f32.gmra.mxu3 %v232_v3  ;;  %516 = vmatmul.f32.gmra.mxu1 %v232_v3  ;;  %v584_v3 = vld [vmem:[%s1194_s5 + $0x88] sm:$0xff] }
  0xb9   :  { %672 = vmatpush.msra.mxu1 %v585_v2  ;;  %789 = vmatpush.msrb.mxu3 %v585_v2 }
  0xba   :  { %v144_v6 = vpop.f32.mrf.mxu0 }
  0xbb   :  { %v200_v7 = vpop.f32.mrf.mxu1  ;;  %v145_v8 = vadd.f32 %v144_v6, %v960_v22  ;;  %673 = vmatpush.msra.mxu1 %v584_v3  ;;  %790 = vmatpush.msrb.mxu3 %v584_v3  ;;  %v311_v6 = vld [vmem:[%s1193_s4] sm:$0x3] }
  0xbc   :  { %v201_v9 = vadd.f32 %v200_v7, %v962_v23  ;;  %v1089_v7 = vperm.slane %v311_v6, 1  ;;  %v1092_v12 = vperm.slane %v311_v6, 0 }
  0xbd   :  { %v233_v10 = vmax.f32 %v145_v8, 0.0 }
  0xbe   :  { %v234_v11 = vmax.f32 %v201_v9, 0.0 }
  0xbf   :  { %351 = vmatmul.f32.gmra.mxu2 %v233_v10  ;;  %463 = vmatmul.f32.gmra.mxu0 %v233_v10 }
  0xc0   :  { %407 = vmatmul.f32.gmra.mxu3 %v234_v11  ;;  %519 = vmatmul.f32.gmra.mxu1 %v234_v11 }
  0xc2   :  { %v147_v15 = vpop.f32.mrf.mxu0 }
  0xc3   :  { %v203_v16 = vpop.f32.mrf.mxu1  ;;  %v148_v17 = vadd.f32 %v147_v15, %v960_v22 }
  0xc4   :  { %v204_v18 = vadd.f32 %v203_v16, %v962_v23 }
  0xc5   :  { %v235_v19 = vmax.f32 %v148_v17, 0.0 }
  0xc6   :  { %v236_v20 = vmax.f32 %v204_v18, 0.0 }
  0xc7   :  { %354 = vmatmul.f32.gmra.mxu2 %v235_v19  ;;  %466 = vmatmul.f32.gmra.mxu0 %v235_v19 }
  0xc8   :  { %410 = vmatmul.f32.gmra.mxu3 %v236_v20  ;;  %522 = vmatmul.f32.gmra.mxu1 %v236_v20 }
  0xca   :  { %v150_v26 = vpop.f32.mrf.mxu0 }
  0xcb   :  { %v206_v27 = vpop.f32.mrf.mxu1  ;;  %v151_v28 = vadd.f32 %v150_v26, %v960_v22 }
  0xcc   :  { %v207_v29 = vadd.f32 %v206_v27, %v962_v23 }
  0xcd   :  { %v237_v30 = vmax.f32 %v151_v28, 0.0 }
  0xce   :  { %v238_v31 = vmax.f32 %v207_v29, 0.0 }
  0xcf   :  { %357 = vmatmul.f32.gmra.mxu2 %v237_v30  ;;  %469 = vmatmul.f32.gmra.mxu0 %v237_v30 }
  0xd0   :  { %413 = vmatmul.f32.gmra.mxu3 %v238_v31  ;;  %525 = vmatmul.f32.gmra.mxu1 %v238_v31 }
  0xd2   :  { %v153_v37 = vpop.f32.mrf.mxu0 }
  0xd3   :  { %v209_v38 = vpop.f32.mrf.mxu1  ;;  %v154_v39 = vadd.f32 %v153_v37, %v960_v22 }
  0xd4   :  { %v210_v40 = vadd.f32 %v209_v38, %v962_v23 }
  0xd5   :  { %v239_v43 = vmax.f32 %v154_v39, 0.0 }
  0xd6   :  { %v240_v44 = vmax.f32 %v210_v40, 0.0 }
  0xd7   :  { %360 = vmatmul.f32.gmra.mxu2 %v239_v43  ;;  %472 = vmatmul.f32.gmra.mxu0 %v239_v43 }
  0xd8   :  { %416 = vmatmul.f32.gmra.mxu3 %v240_v44  ;;  %528 = vmatmul.f32.gmra.mxu1 %v240_v44 }
  0xda   :  { %v156_v48 = vpop.f32.mrf.mxu0 }
  0xdb   :  { %v212_v49 = vpop.f32.mrf.mxu1  ;;  %v157_v50 = vadd.f32 %v156_v48, %v960_v22 }
  0xdc   :  { %v213_v51 = vadd.f32 %v212_v49, %v962_v23 }
  0xdd   :  { %v241_v52 = vmax.f32 %v157_v50, 0.0 }
  0xde   :  { %v242_v53 = vmax.f32 %v213_v51, 0.0 }
  0xdf   :  { %363 = vmatmul.f32.gmra.mxu2 %v241_v52  ;;  %475 = vmatmul.f32.gmra.mxu0 %v241_v52 }
  0xe0   :  { %419 = vmatmul.f32.gmra.mxu3 %v242_v53  ;;  %531 = vmatmul.f32.gmra.mxu1 %v242_v53 }
  0xe2   :  { %v159_v54 = vpop.f32.mrf.mxu0 }
  0xe3   :  { %v215_v55 = vpop.f32.mrf.mxu1  ;;  %v160_v56 = vadd.f32 %v159_v54, %v960_v22 }
  0xe4   :  { %v216_v57 = vadd.f32 %v215_v55, %v962_v23 }
  0xe5   :  { %v243_v58 = vmax.f32 %v160_v56, 0.0 }
  0xe6   :  { %v244_v59 = vmax.f32 %v216_v57, 0.0 }
  0xe7   :  { %366 = vmatmul.f32.gmra.mxu2 %v243_v58  ;;  %478 = vmatmul.f32.gmra.mxu0 %v243_v58 }
  0xe8   :  { %422 = vmatmul.f32.gmra.mxu3 %v244_v59  ;;  %534 = vmatmul.f32.gmra.mxu1 %v244_v59 }
  0xea   :  { %v162_v60 = vpop.f32.mrf.mxu0 }
  0xeb   :  { %v218_v61 = vpop.f32.mrf.mxu1  ;;  %v163_v62 = vadd.f32 %v162_v60, %v960_v22  ;;  %v569_v22 = vld [vmem:[%s1194_s5 + $0x10] sm:$0xff] }
  0xec   :  { %v219_v63 = vadd.f32 %v218_v61, %v962_v23  ;;  %v583_v23 = vld [vmem:[%s1194_s5 + $0x80] sm:$0xff]  ;;  %773 = vmatpush.msrb.mxu2 %v569_v22  ;;  %616 = vmatpush.msra.mxu0 %v569_v22 }
  0xed   :  { %v245_v0 = vmax.f32 %v163_v62, 0.0  ;;  %674 = vmatpush.msra.mxu1 %v583_v23  ;;  %791 = vmatpush.msrb.mxu3 %v583_v23 }
  0xee   :  { %v246_v1 = vmax.f32 %v219_v63, 0.0  ;;  %774 = vmatpush.msrb.mxu2 %v568_v4  ;;  %617 = vmatpush.msra.mxu0 %v568_v4 }
  0xef   :  { %369 = vmatmul.f32.gmra.mxu2 %v245_v0  ;;  %481 = vmatmul.f32.gmra.mxu0 %v245_v0 }
  0xf0   :  { %425 = vmatmul.f32.gmra.mxu3 %v246_v1  ;;  %537 = vmatmul.f32.gmra.mxu1 %v246_v1 }
  0xf1   :  { %618 = vmatpush.msra.mxu0 %v567_v5  ;;  %775 = vmatpush.msrb.mxu2 %v567_v5 }
 0x10c   :  { %v446_v8 = vpop.f32.mrf.mxu0 }
 0x10d   :  { %v447_v9 = vadd.f32 %v446_v8, %v1089_v7  ;;  %v502_v10 = vpop.f32.mrf.mxu1 }
 0x10f   :  { %v503_v11 = vadd.f32 %v502_v10, %v447_v9 }
 0x111   :  { %v542_v13 = vmax.f32 %v503_v11, 0.0 }
 0x112   :  { %v334_v14 = vpop.f32.mrf.mxu2 }
 0x113   :  { %v335_v15 = vadd.f32 %v334_v14, %v1092_v12  ;;  %675 = vmatmul.f32.vlgmr.msra.gmra.mxu1 %v542_v13  ;;  %v390_v16 = vpop.f32.mrf.mxu3 }
 0x114   :  { %v449_v17 = vpop.f32.mrf.mxu0 }
 0x115   :  { %v391_v18 = vadd.f32 %v390_v16, %v335_v15  ;;  %v450_v19 = vadd.f32 %v449_v17, %v1089_v7  ;;  %v505_v20 = vpop.f32.mrf.mxu1 }
 0x117   :  { %v541_v21 = vmax.f32 %v391_v18, 0.0  ;;  %v506_v24 = vadd.f32 %v505_v20, %v450_v19 }
 0x119   :  { %v544_v25 = vmax.f32 %v506_v24, 0.0  ;;  %619 = vmatmul.f32.vlgmr.msra.gmra.mxu0 %v541_v21 }
 0x11a   :  { %v337_v26 = vpop.f32.mrf.mxu2 }
 0x11b   :  { %v338_v27 = vadd.f32 %v337_v26, %v1092_v12  ;;  %678 = vmatmul.f32.vlgmr.msrb.gmra.mxu3 %v544_v25  ;;  %v393_v28 = vpop.f32.mrf.mxu3 }
 0x11c   :  { %v452_v29 = vpop.f32.mrf.mxu0 }
 0x11d   :  { %v394_v30 = vadd.f32 %v393_v28, %v338_v27  ;;  %v453_v31 = vadd.f32 %v452_v29, %v1089_v7  ;;  %v508_v32 = vpop.f32.mrf.mxu1 }
 0x11f   :  { %v543_v33 = vmax.f32 %v394_v30, 0.0  ;;  %v509_v34 = vadd.f32 %v508_v32, %v453_v31 }
 0x121   :  { %v546_v35 = vmax.f32 %v509_v34, 0.0  ;;  %622 = vmatmul.f32.vlgmr.msrb.gmra.mxu2 %v543_v33 }
 0x122   :  { %v340_v36 = vpop.f32.mrf.mxu2 }
 0x123   :  { %v341_v37 = vadd.f32 %v340_v36, %v1092_v12  ;;  %681 = vmatmul.f32.gmra.mxu3 %v546_v35  ;;  %v396_v38 = vpop.f32.mrf.mxu3 }
 0x124   :  { %v455_v39 = vpop.f32.mrf.mxu0 }
 0x125   :  { %v397_v40 = vadd.f32 %v396_v38, %v341_v37  ;;  %v456_v41 = vadd.f32 %v455_v39, %v1089_v7  ;;  %v511_v42 = vpop.f32.mrf.mxu1 }
 0x127   :  { %v545_v43 = vmax.f32 %v397_v40, 0.0  ;;  %v512_v44 = vadd.f32 %v511_v42, %v456_v41 }
 0x129   :  { %v548_v45 = vmax.f32 %v512_v44, 0.0  ;;  %625 = vmatmul.f32.gmra.mxu2 %v545_v43 }
 0x12a   :  { %v343_v46 = vpop.f32.mrf.mxu2 }
 0x12b   :  { %v344_v47 = vadd.f32 %v343_v46, %v1092_v12  ;;  %684 = vmatmul.f32.gmra.mxu3 %v548_v45  ;;  %v399_v48 = vpop.f32.mrf.mxu3 }
 0x12c   :  { %v458_v49 = vpop.f32.mrf.mxu0 }
 0x12d   :  { %v400_v50 = vadd.f32 %v399_v48, %v344_v47  ;;  %v459_v51 = vadd.f32 %v458_v49, %v1089_v7  ;;  %v514_v52 = vpop.f32.mrf.mxu1 }
 0x12f   :  { %v547_v53 = vmax.f32 %v400_v50, 0.0  ;;  %v515_v54 = vadd.f32 %v514_v52, %v459_v51 }
 0x131   :  { %v550_v55 = vmax.f32 %v515_v54, 0.0  ;;  %628 = vmatmul.f32.gmra.mxu2 %v547_v53 }
 0x132   :  { %v346_v56 = vpop.f32.mrf.mxu2 }
 0x133   :  { %v347_v57 = vadd.f32 %v346_v56, %v1092_v12  ;;  %687 = vmatmul.f32.gmra.mxu3 %v550_v55  ;;  %v402_v58 = vpop.f32.mrf.mxu3 }
 0x134   :  { %v461_v59 = vpop.f32.mrf.mxu0 }
 0x135   :  { %v403_v60 = vadd.f32 %v402_v58, %v347_v57  ;;  %v462_v61 = vadd.f32 %v461_v59, %v1089_v7  ;;  %v517_v62 = vpop.f32.mrf.mxu1 }
 0x137   :  { %v549_v63 = vmax.f32 %v403_v60, 0.0  ;;  %v518_v0 = vadd.f32 %v517_v62, %v462_v61 }
 0x139   :  { %v552_v1 = vmax.f32 %v518_v0, 0.0  ;;  %631 = vmatmul.f32.gmra.mxu2 %v549_v63 }
 0x13a   :  { %v349_v2 = vpop.f32.mrf.mxu2 }
 0x13b   :  { %v350_v3 = vadd.f32 %v349_v2, %v1092_v12  ;;  %690 = vmatmul.f32.gmra.mxu3 %v552_v1  ;;  %v405_v22 = vpop.f32.mrf.mxu3 }
 0x13c   :  { %v464_v23 = vpop.f32.mrf.mxu0 }
 0x13d   :  { %v406_v4 = vadd.f32 %v405_v22, %v350_v3  ;;  %v465_v5 = vadd.f32 %v464_v23, %v1089_v7  ;;  %v520_v6 = vpop.f32.mrf.mxu1 }
 0x13f   :  { %v551_v8 = vmax.f32 %v406_v4, 0.0  ;;  %v521_v9 = vadd.f32 %v520_v6, %v465_v5 }
 0x141   :  { %v554_v10 = vmax.f32 %v521_v9, 0.0  ;;  %634 = vmatmul.f32.gmra.mxu2 %v551_v8 }
 0x142   :  { %v352_v11 = vpop.f32.mrf.mxu2 }
 0x143   :  { %v353_v13 = vadd.f32 %v352_v11, %v1092_v12  ;;  %693 = vmatmul.f32.gmra.mxu3 %v554_v10  ;;  %v408_v14 = vpop.f32.mrf.mxu3 }
 0x144   :  { %v467_v15 = vpop.f32.mrf.mxu0 }
 0x145   :  { %v409_v16 = vadd.f32 %v408_v14, %v353_v13  ;;  %v468_v17 = vadd.f32 %v467_v15, %v1089_v7  ;;  %v523_v18 = vpop.f32.mrf.mxu1  ;;  %v1122_v15 = vld [vmem:[%s1195_s6] ss:$0 sm:$0xff] }
 0x147   :  { %v553_v19 = vmax.f32 %v409_v16, 0.0  ;;  %v524_v20 = vadd.f32 %v523_v18, %v468_v17 }
 0x149   :  { %v556_v21 = vmax.f32 %v524_v20, 0.0  ;;  %637 = vmatmul.f32.gmra.mxu2 %v553_v19 }
 0x14a   :  { %v355_v24 = vpop.f32.mrf.mxu2 }
 0x14b   :  { %v356_v25 = vadd.f32 %v355_v24, %v1092_v12  ;;  %696 = vmatmul.f32.gmra.mxu3 %v556_v21  ;;  %v411_v26 = vpop.f32.mrf.mxu3 }
 0x14c   :  { %v470_v27 = vpop.f32.mrf.mxu0 }
 0x14d   :  { %v412_v28 = vadd.f32 %v411_v26, %v356_v25  ;;  %v471_v29 = vadd.f32 %v470_v27, %v1089_v7  ;;  %v526_v30 = vpop.f32.mrf.mxu1 }
 0x14f   :  { %v555_v31 = vmax.f32 %v412_v28, 0.0  ;;  %v527_v32 = vadd.f32 %v526_v30, %v471_v29 }
 0x151   :  { %v558_v33 = vmax.f32 %v527_v32, 0.0  ;;  %640 = vmatmul.f32.gmra.mxu2 %v555_v31 }
 0x152   :  { %v358_v34 = vpop.f32.mrf.mxu2 }
 0x153   :  { %v359_v35 = vadd.f32 %v358_v34, %v1092_v12  ;;  %699 = vmatmul.f32.gmra.mxu3 %v558_v33  ;;  %v414_v36 = vpop.f32.mrf.mxu3 }
 0x154   :  { %v473_v37 = vpop.f32.mrf.mxu0 }
 0x155   :  { %v415_v38 = vadd.f32 %v414_v36, %v359_v35  ;;  %v474_v39 = vadd.f32 %v473_v37, %v1089_v7  ;;  %v529_v40 = vpop.f32.mrf.mxu1 }
 0x157   :  { %v557_v41 = vmax.f32 %v415_v38, 0.0  ;;  %v530_v42 = vadd.f32 %v529_v40, %v474_v39 }
 0x159   :  { %v560_v43 = vmax.f32 %v530_v42, 0.0  ;;  %643 = vmatmul.f32.gmra.mxu2 %v557_v41 }
 0x15a   :  { %v361_v44 = vpop.f32.mrf.mxu2 }
 0x15b   :  { %v362_v45 = vadd.f32 %v361_v44, %v1092_v12  ;;  %702 = vmatmul.f32.gmra.mxu3 %v560_v43  ;;  %v417_v46 = vpop.f32.mrf.mxu3 }
 0x15c   :  { %v476_v47 = vpop.f32.mrf.mxu0 }
 0x15d   :  { %v418_v48 = vadd.f32 %v417_v46, %v362_v45  ;;  %v477_v49 = vadd.f32 %v476_v47, %v1089_v7  ;;  %v532_v50 = vpop.f32.mrf.mxu1 }
 0x15f   :  { %v559_v51 = vmax.f32 %v418_v48, 0.0  ;;  %v533_v52 = vadd.f32 %v532_v50, %v477_v49 }
 0x161   :  { %v562_v53 = vmax.f32 %v533_v52, 0.0  ;;  %646 = vmatmul.f32.gmra.mxu2 %v559_v51 }
 0x162   :  { %v364_v54 = vpop.f32.mrf.mxu2 }
 0x163   :  { %v365_v55 = vadd.f32 %v364_v54, %v1092_v12  ;;  %705 = vmatmul.f32.gmra.mxu3 %v562_v53  ;;  %v420_v56 = vpop.f32.mrf.mxu3 }
 0x164   :  { %v479_v57 = vpop.f32.mrf.mxu0 }
 0x165   :  { %v421_v58 = vadd.f32 %v420_v56, %v365_v55  ;;  %v480_v59 = vadd.f32 %v479_v57, %v1089_v7  ;;  %v535_v60 = vpop.f32.mrf.mxu1 }
 0x167   :  { %v561_v61 = vmax.f32 %v421_v58, 0.0  ;;  %v536_v62 = vadd.f32 %v535_v60, %v480_v59 }
 0x169   :  { %v564_v63 = vmax.f32 %v536_v62, 0.0  ;;  %649 = vmatmul.f32.gmra.mxu2 %v561_v61 }
 0x16a   :  { %v367_v0 = vpop.f32.mrf.mxu2 }
 0x16b   :  { %v368_v1 = vadd.f32 %v367_v0, %v1092_v12  ;;  %708 = vmatmul.f32.gmra.mxu3 %v564_v63  ;;  %v423_v2 = vpop.f32.mrf.mxu3 }
 0x16c   :  { %v482_v3 = vpop.f32.mrf.mxu0 }
 0x16d   :  { %v424_v22 = vadd.f32 %v423_v2, %v368_v1  ;;  %v483_v23 = vadd.f32 %v482_v3, %v1089_v7  ;;  %v538_v4 = vpop.f32.mrf.mxu1 }
 0x16f   :  { %v563_v5 = vmax.f32 %v424_v22, 0.0  ;;  %v539_v6 = vadd.f32 %v538_v4, %v483_v23 }
 0x171   :  { %v566_v8 = vmax.f32 %v539_v6, 0.0  ;;  %652 = vmatmul.f32.gmra.mxu2 %v563_v5 }
 0x172   :  { %v370_v9 = vpop.f32.mrf.mxu2 }
 0x173   :  { %v371_v10 = vadd.f32 %v370_v9, %v1092_v12  ;;  %711 = vmatmul.f32.gmra.mxu3 %v566_v8  ;;  %v426_v11 = vpop.f32.mrf.mxu3 }
 0x175   :  { %v427_v13 = vadd.f32 %v426_v11, %v371_v10 }
 0x177   :  { %v565_v14 = vmax.f32 %v427_v13, 0.0 }
 0x179   :  { %655 = vmatmul.f32.gmra.mxu2 %v565_v14 }
 0x190   :  { %v676_v17 = vpop.f32.mrf.mxu1 }
 0x196   :  { %v620_v16 = vpop.f32.mrf.mxu0 }
 0x197   :  { %v621_v7 = vadd.f32 %v1122_v15, %v620_v16 }
 0x199   :  { %v677_v18 = vadd.f32 %v676_v17, %v621_v7 }
 0x19b   :  { %716 = vst.msk [vmem:[%s1196_s7] sm:$0xff] %vm715_vm1, %v677_v18 }
 0x19e   :  { %v679_v12 = vpop.f32.mrf.mxu3 }
 0x1a4   :  { %v623_v19 = vpop.f32.mrf.mxu2 }
 0x1a5   :  { %v624_v20 = vadd.f32 %v1122_v15, %v623_v19 }
 0x1a6   :  { %v682_v21 = vpop.f32.mrf.mxu3 }
 0x1a7   :  { %v680_v24 = vadd.f32 %v679_v12, %v624_v20 }
 0x1a9   :  { %717 = vst.msk [vmem:[%s1196_s7 + $0x8] sm:$0xff] %vm715_vm1, %v680_v24 }
 0x1ac   :  { %v626_v25 = vpop.f32.mrf.mxu2 }
 0x1ad   :  { %v627_v26 = vadd.f32 %v1122_v15, %v626_v25 }
 0x1ae   :  { %v685_v27 = vpop.f32.mrf.mxu3 }
 0x1af   :  { %v683_v28 = vadd.f32 %v682_v21, %v627_v26 }
 0x1b1   :  { %718 = vst.msk [vmem:[%s1196_s7 + $0x10] sm:$0xff] %vm715_vm1, %v683_v28 }
 0x1b4   :  { %v629_v29 = vpop.f32.mrf.mxu2 }
 0x1b5   :  { %v630_v30 = vadd.f32 %v1122_v15, %v629_v29 }
 0x1b6   :  { %v688_v31 = vpop.f32.mrf.mxu3 }
 0x1b7   :  { %v686_v32 = vadd.f32 %v685_v27, %v630_v30 }
 0x1b9   :  { %719 = vst.msk [vmem:[%s1196_s7 + $0x18] sm:$0xff] %vm715_vm1, %v686_v32 }
 0x1bc   :  { %v632_v33 = vpop.f32.mrf.mxu2 }
 0x1bd   :  { %v633_v34 = vadd.f32 %v1122_v15, %v632_v33 }
 0x1be   :  { %v691_v35 = vpop.f32.mrf.mxu3 }
 0x1bf   :  { %v689_v36 = vadd.f32 %v688_v31, %v633_v34 }
 0x1c1   :  { %720 = vst.msk [vmem:[%s1196_s7 + $0x20] sm:$0xff] %vm715_vm1, %v689_v36 }
 0x1c4   :  { %v635_v37 = vpop.f32.mrf.mxu2 }
 0x1c5   :  { %v636_v38 = vadd.f32 %v1122_v15, %v635_v37 }
 0x1c6   :  { %v694_v39 = vpop.f32.mrf.mxu3 }
 0x1c7   :  { %v692_v40 = vadd.f32 %v691_v35, %v636_v38 }
 0x1c9   :  { %721 = vst.msk [vmem:[%s1196_s7 + $0x28] sm:$0xff] %vm715_vm1, %v692_v40 }
 0x1cc   :  { %v638_v41 = vpop.f32.mrf.mxu2 }
 0x1cd   :  { %v639_v42 = vadd.f32 %v1122_v15, %v638_v41 }
 0x1ce   :  { %v697_v43 = vpop.f32.mrf.mxu3 }
 0x1cf   :  { %v695_v44 = vadd.f32 %v694_v39, %v639_v42 }
 0x1d1   :  { %722 = vst.msk [vmem:[%s1196_s7 + $0x30] sm:$0xff] %vm715_vm1, %v695_v44 }
 0x1d4   :  { %v641_v45 = vpop.f32.mrf.mxu2 }
 0x1d5   :  { %v642_v46 = vadd.f32 %v1122_v15, %v641_v45 }
 0x1d6   :  { %v700_v47 = vpop.f32.mrf.mxu3 }
 0x1d7   :  { %v698_v48 = vadd.f32 %v697_v43, %v642_v46 }
 0x1d9   :  { %723 = vst.msk [vmem:[%s1196_s7 + $0x38] sm:$0xff] %vm715_vm1, %v698_v48 }
 0x1dc   :  { %v644_v49 = vpop.f32.mrf.mxu2 }
 0x1dd   :  { %v645_v50 = vadd.f32 %v1122_v15, %v644_v49 }
 0x1de   :  { %v703_v52 = vpop.f32.mrf.mxu3 }
 0x1df   :  { %v701_v51 = vadd.f32 %v700_v47, %v645_v50 }
 0x1e1   :  { %724 = vst.msk [vmem:[%s1196_s7 + $0x40] sm:$0xff] %vm715_vm1, %v701_v51 }
 0x1e4   :  { %v647_v53 = vpop.f32.mrf.mxu2 }
 0x1e5   :  { %v648_v54 = vadd.f32 %v1122_v15, %v647_v53 }
 0x1e6   :  { %v706_v56 = vpop.f32.mrf.mxu3 }
 0x1e7   :  { %v704_v55 = vadd.f32 %v703_v52, %v648_v54 }
 0x1e9   :  { %725 = vst.msk [vmem:[%s1196_s7 + $0x48] sm:$0xff] %vm715_vm1, %v704_v55 }
 0x1ec   :  { %v650_v57 = vpop.f32.mrf.mxu2 }
 0x1ed   :  { %v651_v58 = vadd.f32 %v1122_v15, %v650_v57 }
 0x1ee   :  { %v709_v60 = vpop.f32.mrf.mxu3 }
 0x1ef   :  { %v707_v59 = vadd.f32 %v706_v56, %v651_v58 }
 0x1f1   :  { %726 = vst.msk [vmem:[%s1196_s7 + $0x50] sm:$0xff] %vm715_vm1, %v707_v59 }
 0x1f4   :  { %v653_v61 = vpop.f32.mrf.mxu2 }
 0x1f5   :  { %v654_v62 = vadd.f32 %v1122_v15, %v653_v61 }
 0x1f6   :  { %v712_v2 = vpop.f32.mrf.mxu3 }
 0x1f7   :  { %v710_v63 = vadd.f32 %v709_v60, %v654_v62 }
 0x1f9   :  { %727 = vst.msk [vmem:[%s1196_s7 + $0x58] sm:$0xff] %vm715_vm1, %v710_v63 }
 0x1fc   :  { %v656_v0 = vpop.f32.mrf.mxu2 }
 0x1fd   :  { %v657_v1 = vadd.f32 %v1122_v15, %v656_v0 }
 0x1ff   :  { %v713_v3 = vadd.f32 %v712_v2, %v657_v1 }
 0x201   :  { %728 = vst.msk [vmem:[%s1196_s7 + $0x60] sm:$0xff] %vm715_vm1, %v713_v3 }
 0x202   :  { %733 = vsyncpa [#allocation3], 1 }

</bundles_post_ra>
